<compile_context>
chip_gen: v7x
topology: tpu7x:2x2x1
jax: 0.10.0
libtpu: 0.0.40
codegen_flags: <defaults>
</compile_context>

<pallas_src>
import functools

import jax
import jax.numpy as jnp
from jax import lax
from jax.experimental import pallas as pl
from jax.experimental.pallas import tpu as pltpu

LANES = 128
MAX_TILE_ROWS = 2048        # forward pass: 2048 x 128 x 4B = 1 MiB per f32 buffer
MAX_SCORE_TILE_ROWS = 1024  # score pass: smaller per-step working set
STEP_COST_ROWS = 128        # one grid step ~ cost of streaming this many extra rows


# ----------------------------------------------------------------------------- kernels
def _uniform_quant_kernel(scalars_ref, x_ref, out_ref, *, qmax, round_way):
    """Elementwise uniform quantize-dequantize of one (tile_rows, 128) tile."""
    inv_delta = scalars_ref[0]       # scalars in SMEM: [1/delta, zero_point, delta]
    zp = scalars_ref[1]
    delta = scalars_ref[2]

    x = x_ref[...].astype(jnp.float32)
    t = x * inv_delta                # reciprocal hoisted out of the vector path
    if round_way == "round":
        xi = jnp.round(t)
    elif round_way == "floor":
        xi = jnp.floor(t)
    elif round_way == "ceil":
        xi = jnp.ceil(t)
    else:
        raise ValueError(f"unsupported round_way: {round_way}")

    xq = jnp.clip(xi + zp, 0.0, qmax)
    out_ref[...] = ((xq - zp) * delta).astype(out_ref.dtype)


def _score_candidates_kernel(inv_deltas_ref, zps_ref, x_ref, sse_ref, *,
                             n_cand, tile_rows, slab, qmax):
    """Fused, score-only pass: delta-free SSE partials for every candidate.

    sse_ref: (1, n_cand, slab, 128) f32 output block, VMEM-resident across the
    inner ("arbitrary") grid axis; one block per leading ("parallel") split.
    The slab loop keeps the x slab and the n_cand running accumulators in registers.
    """
    @pl.when(pl.program_id(1) == 0)
    def _init():
        sse_ref[...] = jnp.zeros_like(sse_ref)

    # Hoist the per-candidate scalar reads (SMEM) out of the slab loop.
    inv_ds = [inv_deltas_ref[c] for c in range(n_cand)]
    zps = [zps_ref[c] for c in range(n_cand)]

    def body(s, accs):
        off = pl.multiple_of(s * slab, slab)
        xs = x_ref[pl.ds(off, slab), :].astype(jnp.float32)   # one (slab,128) slab
        new = []
        for c in range(n_cand):                                # static, n_cand <= 10
            t = xs * inv_ds[c]
            # delta-free error: (clip(round(x/d)+zp) - zp) - x/d ; scaled by d^2 in JAX
            e = jnp.clip(jnp.round(t) + zps[c], 0.0, qmax) - zps[c] - t
            new.append(accs[c] + e * e)
        return tuple(new)

    acc0 = tuple(jnp.zeros((slab, LANES), jnp.float32) for _ in range(n_cand))
    accs = lax.fori_loop(0, tile_rows // slab, body, acc0)
    for c in range(n_cand):
        sse_ref[0, c] += accs[c]


# ----------------------------------------------------------------------------- wrappers
def pallas_uniform_quantize(x2d, delta, zero_point, n_bits, tile_rows, round_way="round"):
    """x2d: (R, 128). Returns dequantized (R, 128) in x2d.dtype."""
    R, C = x2d.shape
    assert C == LANES and R % tile_rows == 0
    qmax = float(2 ** n_bits - 1)

    delta = jnp.asarray(delta, jnp.float32).reshape(())
    zp = jnp.asarray(zero_point, jnp.float32).reshape(())
    scalars = jnp.stack([1.0 / delta, zp, delta])
    kernel = functools.partial(_uniform_quant_kernel, qmax=qmax, round_way=round_way)

    return pl.pallas_call(
        kernel,
        out_shape=jax.ShapeDtypeStruct((R, C), x2d.dtype),
        grid_spec=pltpu.PrefetchScalarGridSpec(
            num_scalar_prefetch=0,
            grid=(R // tile_rows,),
            in_specs=[
                pl.BlockSpec(memory_space=pltpu.MemorySpace.SMEM),  # [1/delta, zp, delta]
                pl.BlockSpec((tile_rows, C), lambda i: (i, 0)),     # x tile
            ],
            out_specs=pl.BlockSpec((tile_rows, C), lambda i: (i, 0)),
        ),
        compiler_params=pltpu.CompilerParams(
            dimension_semantics=("parallel",),   # purely elementwise -> megacore-friendly
        ),
    )(scalars, x2d)


def pallas_score_candidates(x2d, inv_deltas, zps, n_bits, tile_rows, num_splits, slab):
    """Score-only pass: one HBM read of x, delta-free SSE partials for every candidate.

    Returns (num_splits, n_cand, slab, 128) f32 partials (sum over axes 0,2,3 in JAX).
    """
    R, C = x2d.shape
    n_cand = int(inv_deltas.shape[0])
    assert C == LANES and R % (tile_rows * num_splits) == 0
    tiles_per_split = R // (tile_rows * num_splits)
    qmax = float(2 ** n_bits - 1)

    kernel = functools.partial(_score_candidates_kernel, n_cand=n_cand,
                               tile_rows=tile_rows, slab=slab, qmax=qmax)

    return pl.pallas_call(
        kernel,
        out_shape=jax.ShapeDtypeStruct((num_splits, n_cand, slab, LANES), jnp.float32),
        grid_spec=pltpu.PrefetchScalarGridSpec(
            num_scalar_prefetch=0,
            grid=(num_splits, tiles_per_split),
            in_specs=[
                pl.BlockSpec(memory_space=pltpu.MemorySpace.SMEM),  # inv_deltas (n_cand,)
                pl.BlockSpec(memory_space=pltpu.MemorySpace.SMEM),  # zps        (n_cand,)
                pl.BlockSpec((tile_rows, C),
                             lambda c, i: (c * tiles_per_split + i, 0)),
            ],
            out_specs=pl.BlockSpec((1, n_cand, slab, LANES),
                                   lambda c, i: (c, 0, 0, 0)),
        ),
        compiler_params=pltpu.CompilerParams(
            # leading split axis is parallel (uses both v7x TensorCores); the row
            # accumulation axis keeps the VMEM-resident accumulator -> arbitrary.
            dimension_semantics=("parallel", "arbitrary"),
        ),
    )(inv_deltas.astype(jnp.float32), zps.astype(jnp.float32), x2d)


# ----------------------------------------------------------------------------- glue
def _ceil_to(n, m):
    return -(-n // m) * m


def _prepare(x):
    """Flatten to a lane-dense (rows, 128) slab; pick tile sizes adaptively."""
    orig_shape, orig_dtype = x.shape, x.dtype
    if orig_dtype in (jnp.bfloat16, jnp.float16):
        compute_dtype = orig_dtype           # keep 16-bit inputs 16-bit (half HBM traffic)
    else:
        compute_dtype = jnp.float32
    sub = 16 if jnp.dtype(compute_dtype).itemsize == 2 else 8

    flat = x.reshape(-1)
    if flat.dtype != compute_dtype:
        flat = flat.astype(compute_dtype)
    n_valid = flat.size
    rows = _ceil_to(max(-(-n_valid // LANES), 1), sub)

    # Adaptive tile rows: minimize (grid steps * per-step overhead + padded rows).
    candidates = [t for t in (2048, 1024, 512, 256, 128, 64, 32, 16, 8)
                  if t >= sub and t <= MAX_TILE_ROWS]
    fwd_tr, best_cost = None, None
    for t in candidates:
        steps = -(-rows // t)
        cost = steps * STEP_COST_ROWS + steps * t
        if best_cost is None or cost < best_cost:
            fwd_tr, best_cost = t, cost
    rows_padded = _ceil_to(rows, fwd_tr)

    score_tr = min(fwd_tr, MAX_SCORE_TILE_ROWS)
    score_tiles = rows_padded // score_tr
    num_splits = 2 if (score_tiles >= 2 and score_tiles % 2 == 0) else 1

    pad = rows_padded * LANES - n_valid
    if pad:
        flat = jnp.concatenate([flat, jnp.zeros((pad,), compute_dtype)])
    x2d = flat.reshape(rows_padded, LANES)

    meta = dict(orig_shape=orig_shape, orig_dtype=orig_dtype, n_valid=n_valid, pad=pad,
                fwd_tr=fwd_tr, score_tr=score_tr, num_splits=num_splits, slab=sub)
    return x2d, meta


def _restore(y2d, meta):
    y = y2d.reshape(-1)
    if meta["pad"]:
        y = y[: meta["n_valid"]]
    return y.reshape(meta["orig_shape"]).astype(meta["orig_dtype"])


class UniformQuantizer:
    """JAX/Pallas port of the PyTorch UniformQuantizer forward pass.

    Implements the default path: channel_wise=False, two_part=False,
    split_quantization=False, index=None.
    """

    def __init__(self, n_bits: int = 8, channel_wise: bool = False, is_act: bool = False,
                 two_part: bool = False, split_quantization: bool = False):
        assert 2 <= n_bits <= 8, "bitwidth not supported"
        self.n_bits = n_bits
        self.n_levels = 2 ** n_bits
        self.delta = None
        self.zero_point = None
        self.inited = False
        self.channel_wise = channel_wise
        self.is_act = is_act
        self.two_part = two_part
        self.split_quantization = split_quantization

    def __call__(self, x, round_way: str = "round", index=None):
        # TODO(synk): channel_wise / two_part / split_quantization init paths involve
        # host-side per-channel loops and Counter logic with no clean Pallas equivalent;
        # only the default (tensor-wise, single-part) path is implemented.
        if self.channel_wise or self.two_part or self.split_quantization or index is not None:
            raise NotImplementedError("only the default UniformQuantizer path is implemented")

        x2d, meta = _prepare(x)
        if not self.inited:
            self.delta, self.zero_point = self._init_quantization_scale(x2d, meta)
            self.inited = True
        y2d = pallas_uniform_quantize(x2d, self.delta, self.zero_point,
                                      self.n_bits, meta["fwd_tr"], round_way)
        return _restore(y2d, meta)

    def _init_quantization_scale(self, x2d, meta):
        n_valid = meta["n_valid"]
        flat = x2d.reshape(-1)
        if meta["pad"]:
            flat = flat[:n_valid]
        flat = flat.astype(jnp.float32)

        if self.is_act:
            pcts = [0.999, 0.9999, 0.99999]
        else:
            pcts = [0.97, 0.98, 0.99, 0.995, 0.9995, 0.9997, 0.9999, 0.99995, 0.99999, 1.0]

        # TODO(synk): torch.quantile is an exact sort-based percentile; a streaming Pallas
        # min/max + histogram pass would be cheaper for huge tensors but only approximate,
        # so we keep ONE exact jnp.quantile call (a single sort for all quantiles).
        qs = jnp.asarray(pcts + [1.0 - p for p in pcts], dtype=jnp.float32)
        quants = jnp.quantile(flat, qs)
        new_max = quants[: len(pcts)]
        new_min = quants[len(pcts):]

        qmax = float(self.n_levels - 1)
        deltas = (new_max - new_min) / (self.n_levels - 1)
        deltas = jnp.maximum(deltas, 1e-8)      # guard constant tensors (delta==0 -> NaN)
        zps = jnp.round(-new_min / deltas)
        inv_deltas = 1.0 / deltas               # per-candidate scalar reciprocals (SMEM)

        # Single fused, score-only kernel pass over x for ALL candidates.
        partials = pallas_score_candidates(
            x2d, inv_deltas, zps, self.n_bits,
            meta["score_tr"], meta["num_splits"], meta["slab"])
        sse_scaled = partials.sum(axis=(0, 2, 3))            # delta-free SSE, (n_cand,)

        # Analytic padding correction: padding elements are exactly 0, each contributing
        # (clip(zp, 0, qmax) - zp)^2 in delta-free units. No in-kernel mask needed.
        if meta["pad"]:
            e_pad = jnp.clip(zps, 0.0, qmax) - zps
            sse_scaled = sse_scaled - float(meta["pad"]) * e_pad * e_pad

        sse = deltas * deltas * sse_scaled                   # rescale to real SSE
        best = jnp.argmin(sse)                               # first min wins (== torch '<')
        return deltas[best], zps[best]


# ----------------------------------------------------------------------------- reference
def _reference_forward(x, n_bits, is_act=False):
    n_levels = 2 ** n_bits
    flat = x.reshape(-1)
    if is_act:
        pcts = [0.999, 0.9999, 0.99999]
    else:
        pcts = [0.97, 0.98, 0.99, 0.995, 0.9995, 0.9997, 0.9999, 0.99995, 0.99999, 1.0]
    best_score = 1e10
    delta = None
    zero_point = None
    for pct in pcts:
        new_max = jnp.quantile(flat, pct)
        new_min = jnp.quantile(flat, 1.0 - pct)
        d = (new_max - new_min) / (n_levels - 1)
        z = jnp.round(-new_min / d)
        x_q = jnp.clip(jnp.round(x / d) + z, 0, n_levels - 1)
        x_q = (x_q - z) * d
        score = float(jnp.mean((x - x_q) ** 2))     # lp_loss(p=2, reduction='all')
        if score < best_score:
            best_score = score
            delta, zero_point = d, z
    x_int = jnp.round(x / delta) + zero_point
    x_quant = jnp.clip(x_int, 0, n_levels - 1)
    return (x_quant - zero_point) * delta


# ----------------------------------------------------------------------------- main
if __name__ == "__main__":
    key = jax.random.PRNGKey(0)
    # NCHW activation tensor (mixed-sign, like a pre-activation feature map).
    x = jax.random.normal(key, (2, 4, 16, 16), dtype=jnp.float32)

    quant = UniformQuantizer(n_bits=8, channel_wise=False)
    out = quant(x)
    out = jax.block_until_ready(out)

    ref = _reference_forward(x, n_bits=8, is_act=False)
    assert out.shape == x.shape and out.dtype == x.dtype
    assert bool(jnp.allclose(out, ref, atol=1e-5, rtol=1e-5)), "mismatch vs. JAX reference"

    print("KERNEL_OK")
</pallas_src>

<mosaic_0001>
module attributes {stable_mosaic.version = 11 : i64} {
  func.func @_score_candidates_kernel(%arg0: i32, %arg1: i32, %arg2: memref<10xf32, #tpu.memory_space<smem>>, %arg3: memref<10xf32, #tpu.memory_space<smem>>, %arg4: memref<16x128xf32, #tpu.memory_space<vmem>>, %arg5: memref<1x10x8x128xf32, #tpu.memory_space<vmem>>) attributes {dimension_semantics = [#tpu.dimension_semantics<parallel>, #tpu.dimension_semantics<arbitrary>], iteration_bounds = array<i64: 1, 1>, scalar_prefetch = 0 : i64, scratch_operands = 0 : i64, tpu.core_type = #tpu.core_type<tc>, window_params = [{transform_indices = @transform_0, window_bounds = array<i64: 10>}, {transform_indices = @transform_1, window_bounds = array<i64: 10>}, {transform_indices = @transform_2, window_bounds = array<i64: 16, 128>}, {transform_indices = @transform_3, window_bounds = array<i64: 1, 10, 8, 128>}]} {
    %c0_i32 = arith.constant 0 : i32
    %0 = arith.cmpi eq, %arg1, %c0_i32 : i32
    %1 = arith.extui %0 : i1 to i32
    %c0_i32_0 = arith.constant 0 : i32
    %2 = arith.cmpi ne, %1, %c0_i32_0 : i32
    scf.if %2 {
      %cst_102 = arith.constant 0.000000e+00 : f32
      %95 = vector.broadcast %cst_102 : f32 to vector<1x10x8x128xf32>
      %c0_103 = arith.constant 0 : index
      %c0_104 = arith.constant 0 : index
      %c0_105 = arith.constant 0 : index
      %c0_106 = arith.constant 0 : index
      %96 = vector.load %arg5[%c0_103, %c0_104, %c0_105, %c0_106] : memref<1x10x8x128xf32, #tpu.memory_space<vmem>>, vector<1x10x8x128xf32>
      tpu.vector_store %arg5[%c0_103, %c0_104, %c0_105, %c0_106], %95 {strides = array<i32>} : memref<1x10x8x128xf32, #tpu.memory_space<vmem>>, vector<1x10x8x128xf32>,
    } else {
    }
    %c0 = arith.constant 0 : index
    %3 = memref.load %arg2[%c0] : memref<10xf32, #tpu.memory_space<smem>>
    %c1 = arith.constant 1 : index
    %4 = memref.load %arg2[%c1] : memref<10xf32, #tpu.memory_space<smem>>
    %c2 = arith.constant 2 : index
    %5 = memref.load %arg2[%c2] : memref<10xf32, #tpu.memory_space<smem>>
    %c3 = arith.constant 3 : index
    %6 = memref.load %arg2[%c3] : memref<10xf32, #tpu.memory_space<smem>>
    %c4 = arith.constant 4 : index
    %7 = memref.load %arg2[%c4] : memref<10xf32, #tpu.memory_space<smem>>
    %c5 = arith.constant 5 : index
    %8 = memref.load %arg2[%c5] : memref<10xf32, #tpu.memory_space<smem>>
    %c6 = arith.constant 6 : index
    %9 = memref.load %arg2[%c6] : memref<10xf32, #tpu.memory_space<smem>>
    %c7 = arith.constant 7 : index
    %10 = memref.load %arg2[%c7] : memref<10xf32, #tpu.memory_space<smem>>
    %c8 = arith.constant 8 : index
    %11 = memref.load %arg2[%c8] : memref<10xf32, #tpu.memory_space<smem>>
    %c9 = arith.constant 9 : index
    %12 = memref.load %arg2[%c9] : memref<10xf32, #tpu.memory_space<smem>>
    %c0_1 = arith.constant 0 : index
    %13 = memref.load %arg3[%c0_1] : memref<10xf32, #tpu.memory_space<smem>>
    %c1_2 = arith.constant 1 : index
    %14 = memref.load %arg3[%c1_2] : memref<10xf32, #tpu.memory_space<smem>>
    %c2_3 = arith.constant 2 : index
    %15 = memref.load %arg3[%c2_3] : memref<10xf32, #tpu.memory_space<smem>>
    %c3_4 = arith.constant 3 : index
    %16 = memref.load %arg3[%c3_4] : memref<10xf32, #tpu.memory_space<smem>>
    %c4_5 = arith.constant 4 : index
    %17 = memref.load %arg3[%c4_5] : memref<10xf32, #tpu.memory_space<smem>>
    %c5_6 = arith.constant 5 : index
    %18 = memref.load %arg3[%c5_6] : memref<10xf32, #tpu.memory_space<smem>>
    %c6_7 = arith.constant 6 : index
    %19 = memref.load %arg3[%c6_7] : memref<10xf32, #tpu.memory_space<smem>>
    %c7_8 = arith.constant 7 : index
    %20 = memref.load %arg3[%c7_8] : memref<10xf32, #tpu.memory_space<smem>>
    %c8_9 = arith.constant 8 : index
    %21 = memref.load %arg3[%c8_9] : memref<10xf32, #tpu.memory_space<smem>>
    %c9_10 = arith.constant 9 : index
    %22 = memref.load %arg3[%c9_10] : memref<10xf32, #tpu.memory_space<smem>>
    %cst = arith.constant 0.000000e+00 : f32
    %23 = vector.broadcast %cst : f32 to vector<8x128xf32>
    %cst_11 = arith.constant 0.000000e+00 : f32
    %24 = vector.broadcast %cst_11 : f32 to vector<8x128xf32>
    %cst_12 = arith.constant 0.000000e+00 : f32
    %25 = vector.broadcast %cst_12 : f32 to vector<8x128xf32>
    %cst_13 = arith.constant 0.000000e+00 : f32
    %26 = vector.broadcast %cst_13 : f32 to vector<8x128xf32>
    %cst_14 = arith.constant 0.000000e+00 : f32
    %27 = vector.broadcast %cst_14 : f32 to vector<8x128xf32>
    %cst_15 = arith.constant 0.000000e+00 : f32
    %28 = vector.broadcast %cst_15 : f32 to vector<8x128xf32>
    %cst_16 = arith.constant 0.000000e+00 : f32
    %29 = vector.broadcast %cst_16 : f32 to vector<8x128xf32>
    %cst_17 = arith.constant 0.000000e+00 : f32
    %30 = vector.broadcast %cst_17 : f32 to vector<8x128xf32>
    %cst_18 = arith.constant 0.000000e+00 : f32
    %31 = vector.broadcast %cst_18 : f32 to vector<8x128xf32>
    %cst_19 = arith.constant 0.000000e+00 : f32
    %32 = vector.broadcast %cst_19 : f32 to vector<8x128xf32>
    %c0_i32_20 = arith.constant 0 : i32
    %c2_i32 = arith.constant 2 : i32
    %33 = arith.addi %c0_i32_20, %c2_i32 : i32
    %c1_i32 = arith.constant 1 : i32
    %34:10 = scf.for %arg6 = %c0_i32_20 to %33 step %c1_i32 iter_args(%arg7 = %23, %arg8 = %24, %arg9 = %25, %arg10 = %26, %arg11 = %27, %arg12 = %28, %arg13 = %29, %arg14 = %30, %arg15 = %31, %arg16 = %32) -> (vector<8x128xf32>, vector<8x128xf32>, vector<8x128xf32>, vector<8x128xf32>, vector<8x128xf32>, vector<8x128xf32>, vector<8x128xf32>, vector<8x128xf32>, vector<8x128xf32>, vector<8x128xf32>)  : i32 {
      %c8_i32 = arith.constant 8 : i32
      %95 = arith.muli %arg6, %c8_i32 : i32
      %96 = tpu.assume_multiple %95, 8 : i32
      %97 = arith.index_cast %96 : i32 to index
      %c0_102 = arith.constant 0 : index
      %98 = vector.load %arg4[%97, %c0_102] : memref<16x128xf32, #tpu.memory_space<vmem>>, vector<8x128xf32>
      %99 = vector.broadcast %3 : f32 to vector<8x128xf32>
      %100 = arith.mulf %98, %99 : vector<8x128xf32>
      %101 = math.roundeven %100 : vector<8x128xf32>
      %102 = vector.broadcast %13 : f32 to vector<8x128xf32>
      %103 = arith.addf %101, %102 : vector<8x128xf32>
      %cst_103 = arith.constant 0.000000e+00 : f32
      %cst_104 = arith.constant 2.550000e+02 : f32
      %104 = vector.broadcast %cst_103 : f32 to vector<8x128xf32>
      %105 = arith.maximumf %104, %103 : vector<8x128xf32>
      %106 = vector.broadcast %cst_104 : f32 to vector<8x128xf32>
      %107 = arith.minimumf %106, %105 : vector<8x128xf32>
      %108 = vector.broadcast %13 : f32 to vector<8x128xf32>
      %109 = arith.subf %107, %108 : vector<8x128xf32>
      %110 = arith.subf %109, %100 : vector<8x128xf32>
      %111 = arith.mulf %110, %110 : vector<8x128xf32>
      %112 = arith.addf %arg7, %111 : vector<8x128xf32>
      %113 = vector.broadcast %4 : f32 to vector<8x128xf32>
      %114 = arith.mulf %98, %113 : vector<8x128xf32>
      %115 = math.roundeven %114 : vector<8x128xf32>
      %116 = vector.broadcast %14 : f32 to vector<8x128xf32>
      %117 = arith.addf %115, %116 : vector<8x128xf32>
      %cst_105 = arith.constant 0.000000e+00 : f32
      %cst_106 = arith.constant 2.550000e+02 : f32
      %118 = vector.broadcast %cst_105 : f32 to vector<8x128xf32>
      %119 = arith.maximumf %118, %117 : vector<8x128xf32>
      %120 = vector.broadcast %cst_106 : f32 to vector<8x128xf32>
      %121 = arith.minimumf %120, %119 : vector<8x128xf32>
      %122 = vector.broadcast %14 : f32 to vector<8x128xf32>
      %123 = arith.subf %121, %122 : vector<8x128xf32>
      %124 = arith.subf %123, %114 : vector<8x128xf32>
      %125 = arith.mulf %124, %124 : vector<8x128xf32>
      %126 = arith.addf %arg8, %125 : vector<8x128xf32>
      %127 = vector.broadcast %5 : f32 to vector<8x128xf32>
      %128 = arith.mulf %98, %127 : vector<8x128xf32>
      %129 = math.roundeven %128 : vector<8x128xf32>
      %130 = vector.broadcast %15 : f32 to vector<8x128xf32>
      %131 = arith.addf %129, %130 : vector<8x128xf32>
      %cst_107 = arith.constant 0.000000e+00 : f32
      %cst_108 = arith.constant 2.550000e+02 : f32
      %132 = vector.broadcast %cst_107 : f32 to vector<8x128xf32>
      %133 = arith.maximumf %132, %131 : vector<8x128xf32>
      %134 = vector.broadcast %cst_108 : f32 to vector<8x128xf32>
      %135 = arith.minimumf %134, %133 : vector<8x128xf32>
      %136 = vector.broadcast %15 : f32 to vector<8x128xf32>
      %137 = arith.subf %135, %136 : vector<8x128xf32>
      %138 = arith.subf %137, %128 : vector<8x128xf32>
      %139 = arith.mulf %138, %138 : vector<8x128xf32>
      %140 = arith.addf %arg9, %139 : vector<8x128xf32>
      %141 = vector.broadcast %6 : f32 to vector<8x128xf32>
      %142 = arith.mulf %98, %141 : vector<8x128xf32>
      %143 = math.roundeven %142 : vector<8x128xf32>
      %144 = vector.broadcast %16 : f32 to vector<8x128xf32>
      %145 = arith.addf %143, %144 : vector<8x128xf32>
      %cst_109 = arith.constant 0.000000e+00 : f32
      %cst_110 = arith.constant 2.550000e+02 : f32
      %146 = vector.broadcast %cst_109 : f32 to vector<8x128xf32>
      %147 = arith.maximumf %146, %145 : vector<8x128xf32>
      %148 = vector.broadcast %cst_110 : f32 to vector<8x128xf32>
      %149 = arith.minimumf %148, %147 : vector<8x128xf32>
      %150 = vector.broadcast %16 : f32 to vector<8x128xf32>
      %151 = arith.subf %149, %150 : vector<8x128xf32>
      %152 = arith.subf %151, %142 : vector<8x128xf32>
      %153 = arith.mulf %152, %152 : vector<8x128xf32>
      %154 = arith.addf %arg10, %153 : vector<8x128xf32>
      %155 = vector.broadcast %7 : f32 to vector<8x128xf32>
      %156 = arith.mulf %98, %155 : vector<8x128xf32>
      %157 = math.roundeven %156 : vector<8x128xf32>
      %158 = vector.broadcast %17 : f32 to vector<8x128xf32>
      %159 = arith.addf %157, %158 : vector<8x128xf32>
      %cst_111 = arith.constant 0.000000e+00 : f32
      %cst_112 = arith.constant 2.550000e+02 : f32
      %160 = vector.broadcast %cst_111 : f32 to vector<8x128xf32>
      %161 = arith.maximumf %160, %159 : vector<8x128xf32>
      %162 = vector.broadcast %cst_112 : f32 to vector<8x128xf32>
      %163 = arith.minimumf %162, %161 : vector<8x128xf32>
      %164 = vector.broadcast %17 : f32 to vector<8x128xf32>
      %165 = arith.subf %163, %164 : vector<8x128xf32>
      %166 = arith.subf %165, %156 : vector<8x128xf32>
      %167 = arith.mulf %166, %166 : vector<8x128xf32>
      %168 = arith.addf %arg11, %167 : vector<8x128xf32>
      %169 = vector.broadcast %8 : f32 to vector<8x128xf32>
      %170 = arith.mulf %98, %169 : vector<8x128xf32>
      %171 = math.roundeven %170 : vector<8x128xf32>
      %172 = vector.broadcast %18 : f32 to vector<8x128xf32>
      %173 = arith.addf %171, %172 : vector<8x128xf32>
      %cst_113 = arith.constant 0.000000e+00 : f32
      %cst_114 = arith.constant 2.550000e+02 : f32
      %174 = vector.broadcast %cst_113 : f32 to vector<8x128xf32>
      %175 = arith.maximumf %174, %173 : vector<8x128xf32>
      %176 = vector.broadcast %cst_114 : f32 to vector<8x128xf32>
      %177 = arith.minimumf %176, %175 : vector<8x128xf32>
      %178 = vector.broadcast %18 : f32 to vector<8x128xf32>
      %179 = arith.subf %177, %178 : vector<8x128xf32>
      %180 = arith.subf %179, %170 : vector<8x128xf32>
      %181 = arith.mulf %180, %180 : vector<8x128xf32>
      %182 = arith.addf %arg12, %181 : vector<8x128xf32>
      %183 = vector.broadcast %9 : f32 to vector<8x128xf32>
      %184 = arith.mulf %98, %183 : vector<8x128xf32>
      %185 = math.roundeven %184 : vector<8x128xf32>
      %186 = vector.broadcast %19 : f32 to vector<8x128xf32>
      %187 = arith.addf %185, %186 : vector<8x128xf32>
      %cst_115 = arith.constant 0.000000e+00 : f32
      %cst_116 = arith.constant 2.550000e+02 : f32
      %188 = vector.broadcast %cst_115 : f32 to vector<8x128xf32>
      %189 = arith.maximumf %188, %187 : vector<8x128xf32>
      %190 = vector.broadcast %cst_116 : f32 to vector<8x128xf32>
      %191 = arith.minimumf %190, %189 : vector<8x128xf32>
      %192 = vector.broadcast %19 : f32 to vector<8x128xf32>
      %193 = arith.subf %191, %192 : vector<8x128xf32>
      %194 = arith.subf %193, %184 : vector<8x128xf32>
      %195 = arith.mulf %194, %194 : vector<8x128xf32>
      %196 = arith.addf %arg13, %195 : vector<8x128xf32>
      %197 = vector.broadcast %10 : f32 to vector<8x128xf32>
      %198 = arith.mulf %98, %197 : vector<8x128xf32>
      %199 = math.roundeven %198 : vector<8x128xf32>
      %200 = vector.broadcast %20 : f32 to vector<8x128xf32>
      %201 = arith.addf %199, %200 : vector<8x128xf32>
      %cst_117 = arith.constant 0.000000e+00 : f32
      %cst_118 = arith.constant 2.550000e+02 : f32
      %202 = vector.broadcast %cst_117 : f32 to vector<8x128xf32>
      %203 = arith.maximumf %202, %201 : vector<8x128xf32>
      %204 = vector.broadcast %cst_118 : f32 to vector<8x128xf32>
      %205 = arith.minimumf %204, %203 : vector<8x128xf32>
      %206 = vector.broadcast %20 : f32 to vector<8x128xf32>
      %207 = arith.subf %205, %206 : vector<8x128xf32>
      %208 = arith.subf %207, %198 : vector<8x128xf32>
      %209 = arith.mulf %208, %208 : vector<8x128xf32>
      %210 = arith.addf %arg14, %209 : vector<8x128xf32>
      %211 = vector.broadcast %11 : f32 to vector<8x128xf32>
      %212 = arith.mulf %98, %211 : vector<8x128xf32>
      %213 = math.roundeven %212 : vector<8x128xf32>
      %214 = vector.broadcast %21 : f32 to vector<8x128xf32>
      %215 = arith.addf %213, %214 : vector<8x128xf32>
      %cst_119 = arith.constant 0.000000e+00 : f32
      %cst_120 = arith.constant 2.550000e+02 : f32
      %216 = vector.broadcast %cst_119 : f32 to vector<8x128xf32>
      %217 = arith.maximumf %216, %215 : vector<8x128xf32>
      %218 = vector.broadcast %cst_120 : f32 to vector<8x128xf32>
      %219 = arith.minimumf %218, %217 : vector<8x128xf32>
      %220 = vector.broadcast %21 : f32 to vector<8x128xf32>
      %221 = arith.subf %219, %220 : vector<8x128xf32>
      %222 = arith.subf %221, %212 : vector<8x128xf32>
      %223 = arith.mulf %222, %222 : vector<8x128xf32>
      %224 = arith.addf %arg15, %223 : vector<8x128xf32>
      %225 = vector.broadcast %12 : f32 to vector<8x128xf32>
      %226 = arith.mulf %98, %225 : vector<8x128xf32>
      %227 = math.roundeven %226 : vector<8x128xf32>
      %228 = vector.broadcast %22 : f32 to vector<8x128xf32>
      %229 = arith.addf %227, %228 : vector<8x128xf32>
      %cst_121 = arith.constant 0.000000e+00 : f32
      %cst_122 = arith.constant 2.550000e+02 : f32
      %230 = vector.broadcast %cst_121 : f32 to vector<8x128xf32>
      %231 = arith.maximumf %230, %229 : vector<8x128xf32>
      %232 = vector.broadcast %cst_122 : f32 to vector<8x128xf32>
      %233 = arith.minimumf %232, %231 : vector<8x128xf32>
      %234 = vector.broadcast %22 : f32 to vector<8x128xf32>
      %235 = arith.subf %233, %234 : vector<8x128xf32>
      %236 = arith.subf %235, %226 : vector<8x128xf32>
      %237 = arith.mulf %236, %236 : vector<8x128xf32>
      %238 = arith.addf %arg16, %237 : vector<8x128xf32>
      scf.yield %112, %126, %140, %154, %168, %182, %196, %210, %224, %238 : vector<8x128xf32>, vector<8x128xf32>, vector<8x128xf32>, vector<8x128xf32>, vector<8x128xf32>, vector<8x128xf32>, vector<8x128xf32>, vector<8x128xf32>, vector<8x128xf32>, vector<8x128xf32>
    }
    %c2_i32_21 = arith.constant 2 : i32
    %c0_22 = arith.constant 0 : index
    %c0_23 = arith.constant 0 : index
    %c0_24 = arith.constant 0 : index
    %c0_25 = arith.constant 0 : index
    %35 = vector.load %arg5[%c0_22, %c0_23, %c0_24, %c0_25] : memref<1x10x8x128xf32, #tpu.memory_space<vmem>>, vector<1x1x8x128xf32>
    %36 = vector.shape_cast %35 : vector<1x1x8x128xf32> to vector<8x128xf32>
    %37 = arith.addf %36, %34#0 : vector<8x128xf32>
    %c0_26 = arith.constant 0 : index
    %c0_27 = arith.constant 0 : index
    %c0_28 = arith.constant 0 : index
    %c0_29 = arith.constant 0 : index
    %38 = vector.load %arg5[%c0_26, %c0_27, %c0_28, %c0_29] : memref<1x10x8x128xf32, #tpu.memory_space<vmem>>, vector<1x1x8x128xf32>
    %39 = vector.shape_cast %38 : vector<1x1x8x128xf32> to vector<8x128xf32>
    %40 = vector.shape_cast %37 : vector<8x128xf32> to vector<1x1x8x128xf32>
    tpu.vector_store %arg5[%c0_26, %c0_27, %c0_28, %c0_29], %40 {strides = array<i32>} : memref<1x10x8x128xf32, #tpu.memory_space<vmem>>, vector<1x1x8x128xf32>,
    %c0_30 = arith.constant 0 : index
    %c1_31 = arith.constant 1 : index
    %c0_32 = arith.constant 0 : index
    %c0_33 = arith.constant 0 : index
    %41 = vector.load %arg5[%c0_30, %c1_31, %c0_32, %c0_33] : memref<1x10x8x128xf32, #tpu.memory_space<vmem>>, vector<1x1x8x128xf32>
    %42 = vector.shape_cast %41 : vector<1x1x8x128xf32> to vector<8x128xf32>
    %43 = arith.addf %42, %34#1 : vector<8x128xf32>
    %c0_34 = arith.constant 0 : index
    %c1_35 = arith.constant 1 : index
    %c0_36 = arith.constant 0 : index
    %c0_37 = arith.constant 0 : index
    %44 = vector.load %arg5[%c0_34, %c1_35, %c0_36, %c0_37] : memref<1x10x8x128xf32, #tpu.memory_space<vmem>>, vector<1x1x8x128xf32>
    %45 = vector.shape_cast %44 : vector<1x1x8x128xf32> to vector<8x128xf32>
    %46 = vector.shape_cast %43 : vector<8x128xf32> to vector<1x1x8x128xf32>
    tpu.vector_store %arg5[%c0_34, %c1_35, %c0_36, %c0_37], %46 {strides = array<i32>} : memref<1x10x8x128xf32, #tpu.memory_space<vmem>>, vector<1x1x8x128xf32>,
    %c0_38 = arith.constant 0 : index
    %c2_39 = arith.constant 2 : index
    %c0_40 = arith.constant 0 : index
    %c0_41 = arith.constant 0 : index
    %47 = vector.load %arg5[%c0_38, %c2_39, %c0_40, %c0_41] : memref<1x10x8x128xf32, #tpu.memory_space<vmem>>, vector<1x1x8x128xf32>
    %48 = vector.shape_cast %47 : vector<1x1x8x128xf32> to vector<8x128xf32>
    %49 = arith.addf %48, %34#2 : vector<8x128xf32>
    %c0_42 = arith.constant 0 : index
    %c2_43 = arith.constant 2 : index
    %c0_44 = arith.constant 0 : index
    %c0_45 = arith.constant 0 : index
    %50 = vector.load %arg5[%c0_42, %c2_43, %c0_44, %c0_45] : memref<1x10x8x128xf32, #tpu.memory_space<vmem>>, vector<1x1x8x128xf32>
    %51 = vector.shape_cast %50 : vector<1x1x8x128xf32> to vector<8x128xf32>
    %52 = vector.shape_cast %49 : vector<8x128xf32> to vector<1x1x8x128xf32>
    tpu.vector_store %arg5[%c0_42, %c2_43, %c0_44, %c0_45], %52 {strides = array<i32>} : memref<1x10x8x128xf32, #tpu.memory_space<vmem>>, vector<1x1x8x128xf32>,
    %c0_46 = arith.constant 0 : index
    %c3_47 = arith.constant 3 : index
    %c0_48 = arith.constant 0 : index
    %c0_49 = arith.constant 0 : index
    %53 = vector.load %arg5[%c0_46, %c3_47, %c0_48, %c0_49] : memref<1x10x8x128xf32, #tpu.memory_space<vmem>>, vector<1x1x8x128xf32>
    %54 = vector.shape_cast %53 : vector<1x1x8x128xf32> to vector<8x128xf32>
    %55 = arith.addf %54, %34#3 : vector<8x128xf32>
    %c0_50 = arith.constant 0 : index
    %c3_51 = arith.constant 3 : index
    %c0_52 = arith.constant 0 : index
    %c0_53 = arith.constant 0 : index
    %56 = vector.load %arg5[%c0_50, %c3_51, %c0_52, %c0_53] : memref<1x10x8x128xf32, #tpu.memory_space<vmem>>, vector<1x1x8x128xf32>
    %57 = vector.shape_cast %56 : vector<1x1x8x128xf32> to vector<8x128xf32>
    %58 = vector.shape_cast %55 : vector<8x128xf32> to vector<1x1x8x128xf32>
    tpu.vector_store %arg5[%c0_50, %c3_51, %c0_52, %c0_53], %58 {strides = array<i32>} : memref<1x10x8x128xf32, #tpu.memory_space<vmem>>, vector<1x1x8x128xf32>,
    %c0_54 = arith.constant 0 : index
    %c4_55 = arith.constant 4 : index
    %c0_56 = arith.constant 0 : index
    %c0_57 = arith.constant 0 : index
    %59 = vector.load %arg5[%c0_54, %c4_55, %c0_56, %c0_57] : memref<1x10x8x128xf32, #tpu.memory_space<vmem>>, vector<1x1x8x128xf32>
    %60 = vector.shape_cast %59 : vector<1x1x8x128xf32> to vector<8x128xf32>
    %61 = arith.addf %60, %34#4 : vector<8x128xf32>
    %c0_58 = arith.constant 0 : index
    %c4_59 = arith.constant 4 : index
    %c0_60 = arith.constant 0 : index
    %c0_61 = arith.constant 0 : index
    %62 = vector.load %arg5[%c0_58, %c4_59, %c0_60, %c0_61] : memref<1x10x8x128xf32, #tpu.memory_space<vmem>>, vector<1x1x8x128xf32>
    %63 = vector.shape_cast %62 : vector<1x1x8x128xf32> to vector<8x128xf32>
    %64 = vector.shape_cast %61 : vector<8x128xf32> to vector<1x1x8x128xf32>
    tpu.vector_store %arg5[%c0_58, %c4_59, %c0_60, %c0_61], %64 {strides = array<i32>} : memref<1x10x8x128xf32, #tpu.memory_space<vmem>>, vector<1x1x8x128xf32>,
    %c0_62 = arith.constant 0 : index
    %c5_63 = arith.constant 5 : index
    %c0_64 = arith.constant 0 : index
    %c0_65 = arith.constant 0 : index
    %65 = vector.load %arg5[%c0_62, %c5_63, %c0_64, %c0_65] : memref<1x10x8x128xf32, #tpu.memory_space<vmem>>, vector<1x1x8x128xf32>
    %66 = vector.shape_cast %65 : vector<1x1x8x128xf32> to vector<8x128xf32>
    %67 = arith.addf %66, %34#5 : vector<8x128xf32>
    %c0_66 = arith.constant 0 : index
    %c5_67 = arith.constant 5 : index
    %c0_68 = arith.constant 0 : index
    %c0_69 = arith.constant 0 : index
    %68 = vector.load %arg5[%c0_66, %c5_67, %c0_68, %c0_69] : memref<1x10x8x128xf32, #tpu.memory_space<vmem>>, vector<1x1x8x128xf32>
    %69 = vector.shape_cast %68 : vector<1x1x8x128xf32> to vector<8x128xf32>
    %70 = vector.shape_cast %67 : vector<8x128xf32> to vector<1x1x8x128xf32>
    tpu.vector_store %arg5[%c0_66, %c5_67, %c0_68, %c0_69], %70 {strides = array<i32>} : memref<1x10x8x128xf32, #tpu.memory_space<vmem>>, vector<1x1x8x128xf32>,
    %c0_70 = arith.constant 0 : index
    %c6_71 = arith.constant 6 : index
    %c0_72 = arith.constant 0 : index
    %c0_73 = arith.constant 0 : index
    %71 = vector.load %arg5[%c0_70, %c6_71, %c0_72, %c0_73] : memref<1x10x8x128xf32, #tpu.memory_space<vmem>>, vector<1x1x8x128xf32>
    %72 = vector.shape_cast %71 : vector<1x1x8x128xf32> to vector<8x128xf32>
    %73 = arith.addf %72, %34#6 : vector<8x128xf32>
    %c0_74 = arith.constant 0 : index
    %c6_75 = arith.constant 6 : index
    %c0_76 = arith.constant 0 : index
    %c0_77 = arith.constant 0 : index
    %74 = vector.load %arg5[%c0_74, %c6_75, %c0_76, %c0_77] : memref<1x10x8x128xf32, #tpu.memory_space<vmem>>, vector<1x1x8x128xf32>
    %75 = vector.shape_cast %74 : vector<1x1x8x128xf32> to vector<8x128xf32>
    %76 = vector.shape_cast %73 : vector<8x128xf32> to vector<1x1x8x128xf32>
    tpu.vector_store %arg5[%c0_74, %c6_75, %c0_76, %c0_77], %76 {strides = array<i32>} : memref<1x10x8x128xf32, #tpu.memory_space<vmem>>, vector<1x1x8x128xf32>,
    %c0_78 = arith.constant 0 : index
    %c7_79 = arith.constant 7 : index
    %c0_80 = arith.constant 0 : index
    %c0_81 = arith.constant 0 : index
    %77 = vector.load %arg5[%c0_78, %c7_79, %c0_80, %c0_81] : memref<1x10x8x128xf32, #tpu.memory_space<vmem>>, vector<1x1x8x128xf32>
    %78 = vector.shape_cast %77 : vector<1x1x8x128xf32> to vector<8x128xf32>
    %79 = arith.addf %78, %34#7 : vector<8x128xf32>
    %c0_82 = arith.constant 0 : index
    %c7_83 = arith.constant 7 : index
    %c0_84 = arith.constant 0 : index
    %c0_85 = arith.constant 0 : index
    %80 = vector.load %arg5[%c0_82, %c7_83, %c0_84, %c0_85] : memref<1x10x8x128xf32, #tpu.memory_space<vmem>>, vector<1x1x8x128xf32>
    %81 = vector.shape_cast %80 : vector<1x1x8x128xf32> to vector<8x128xf32>
    %82 = vector.shape_cast %79 : vector<8x128xf32> to vector<1x1x8x128xf32>
    tpu.vector_store %arg5[%c0_82, %c7_83, %c0_84, %c0_85], %82 {strides = array<i32>} : memref<1x10x8x128xf32, #tpu.memory_space<vmem>>, vector<1x1x8x128xf32>,
    %c0_86 = arith.constant 0 : index
    %c8_87 = arith.constant 8 : index
    %c0_88 = arith.constant 0 : index
    %c0_89 = arith.constant 0 : index
    %83 = vector.load %arg5[%c0_86, %c8_87, %c0_88, %c0_89] : memref<1x10x8x128xf32, #tpu.memory_space<vmem>>, vector<1x1x8x128xf32>
    %84 = vector.shape_cast %83 : vector<1x1x8x128xf32> to vector<8x128xf32>
    %85 = arith.addf %84, %34#8 : vector<8x128xf32>
    %c0_90 = arith.constant 0 : index
    %c8_91 = arith.constant 8 : index
    %c0_92 = arith.constant 0 : index
    %c0_93 = arith.constant 0 : index
    %86 = vector.load %arg5[%c0_90, %c8_91, %c0_92, %c0_93] : memref<1x10x8x128xf32, #tpu.memory_space<vmem>>, vector<1x1x8x128xf32>
    %87 = vector.shape_cast %86 : vector<1x1x8x128xf32> to vector<8x128xf32>
    %88 = vector.shape_cast %85 : vector<8x128xf32> to vector<1x1x8x128xf32>
    tpu.vector_store %arg5[%c0_90, %c8_91, %c0_92, %c0_93], %88 {strides = array<i32>} : memref<1x10x8x128xf32, #tpu.memory_space<vmem>>, vector<1x1x8x128xf32>,
    %c0_94 = arith.constant 0 : index
    %c9_95 = arith.constant 9 : index
    %c0_96 = arith.constant 0 : index
    %c0_97 = arith.constant 0 : index
    %89 = vector.load %arg5[%c0_94, %c9_95, %c0_96, %c0_97] : memref<1x10x8x128xf32, #tpu.memory_space<vmem>>, vector<1x1x8x128xf32>
    %90 = vector.shape_cast %89 : vector<1x1x8x128xf32> to vector<8x128xf32>
    %91 = arith.addf %90, %34#9 : vector<8x128xf32>
    %c0_98 = arith.constant 0 : index
    %c9_99 = arith.constant 9 : index
    %c0_100 = arith.constant 0 : index
    %c0_101 = arith.constant 0 : index
    %92 = vector.load %arg5[%c0_98, %c9_99, %c0_100, %c0_101] : memref<1x10x8x128xf32, #tpu.memory_space<vmem>>, vector<1x1x8x128xf32>
    %93 = vector.shape_cast %92 : vector<1x1x8x128xf32> to vector<8x128xf32>
    %94 = vector.shape_cast %91 : vector<8x128xf32> to vector<1x1x8x128xf32>
    tpu.vector_store %arg5[%c0_98, %c9_99, %c0_100, %c0_101], %94 {strides = array<i32>} : memref<1x10x8x128xf32, #tpu.memory_space<vmem>>, vector<1x1x8x128xf32>,
    return
  }
  func.func @transform_0(%arg0: i32, %arg1: i32) -> i32 {
    %c0_i32 = arith.constant 0 : i32
    %c0_i32_0 = arith.constant 0 : i32
    return %c0_i32 : i32
  }
  func.func @transform_1(%arg0: i32, %arg1: i32) -> i32 {
    %c0_i32 = arith.constant 0 : i32
    %c0_i32_0 = arith.constant 0 : i32
    return %c0_i32 : i32
  }
  func.func @transform_2(%arg0: i32, %arg1: i32) -> (i32, i32) {
    %c1_i32 = arith.constant 1 : i32
    %0 = arith.muli %arg0, %c1_i32 : i32
    %1 = arith.addi %0, %arg1 : i32
    %c0_i32 = arith.constant 0 : i32
    %c0_i32_0 = arith.constant 0 : i32
    return %1, %c0_i32 : i32, i32
  }
  func.func @transform_3(%arg0: i32, %arg1: i32) -> (i32, i32, i32, i32) {
    %c0_i32 = arith.constant 0 : i32
    %c0_i32_0 = arith.constant 0 : i32
    %c0_i32_1 = arith.constant 0 : i32
    %c0_i32_2 = arith.constant 0 : i32
    return %arg0, %c0_i32, %c0_i32_0, %c0_i32_1 : i32, i32, i32, i32
  }
}

</mosaic_0001>

<bundles_post_ra>
// kernel: tpu_custom_call.1
= control target key start
LH: loop header
LB: loop body
LE: loop exit
PB: predicated region body
PF: predicated region fallthrough
CT: control target
= control target key end

     0   :  { %8 = vsyncpa [#allocation5], 0  ;;  %s835_s0 = inlined_call_operand.hbm [shape: f32[10], index: 0, kind: input, shape index: {}]   ;;  %s836_s1 = inlined_call_operand.vmem [shape: f32[10], index: 1, kind: input, shape index: {}]   ;;  %s837_s2 = inlined_call_operand.hbm [shape: f32[16,128], index: 2, kind: input, shape index: {}]   ;;  %s838_s3 = inlined_call_operand.hbm [shape: f32[1,10,8,128], index: 3, kind: output, shape index: {}]  }
   0x1   :  { %9 = vsyncpa [#allocation6], 0 }
   0x2   :  { %10 = vsyncpa [#allocation3], 0 }
   0x3   :  { %11 = vsyncpa [#allocation4], 0  ;;  %s26_s14 = sshll.u32 %s836_s1, 4  ;;  %s440_s17 = scalar_lea.hbm %s835_s0, 16  ;;  %s27_s14 = int_to_ptr.vmem [resolvable:$true] %s26_s14 }
   0x4   :  { %p441_p0 = scmp.ne.s32.totalorder %s835_s0, %s440_s17  ;;  %p444_p1 = scmp.lt.u32.totalorder %s440_s17, %s835_s0 }
   0x6   :  { %p446_p2 = pnand %p444_p1, %p441_p0 }
   0x8   :  { %449 = shalt.err (!%p446_p2)
}
   0x9   :  { %s602_s22 = smov [#allocation2]   ;;  %s450_s1 = scalar_lea.vmem %s27_s14, 16 }
   0xa   :  { %19 = dma.hbm_to_smem %s835_s0, 16, %s602_s22, [#allocation5]  }
   0xb   :  { %p451_p3 = scmp.ne.s32.totalorder %s27_s14, %s450_s1  ;;  %p455_p4 = scmp.lt.s32.totalorder %s27_s14, %s27_s14 }
   0xc   :  { %p456_p5 = scmp.lt.s32.totalorder %s450_s1, %s450_s1 }
   0xe   :  { %p457_p6 = por %p456_p5, %p455_p4 }
  0x10   :  { %p458_p7 = pnand %p457_p6, %p451_p3 }
  0x12   :  { %461 = shalt.err (!%p458_p7)
}
  0x13   :  { %s603_s25 = smov [#allocation7]   ;;  %s604_s26 = smov [#allocation8]  }
  0x14   :  { %29 = dma.vmem_to_smem %s27_s14, 16, %s603_s25, [#allocation6]  }
  0x15   :  { %s39_s27 = sshll.u32 %s604_s26, 4  ;;  %s462_s30 = scalar_lea.hbm %s837_s2, 256  ;;  %s40_s27 = int_to_ptr.vmem [resolvable:$true] %s39_s27 }
  0x16   :  { %p463_p8 = scmp.ne.s32.totalorder %s837_s2, %s462_s30  ;;  %p466_p9 = scmp.lt.u32.totalorder %s462_s30, %s837_s2 }
  0x18   :  { %p468_p10 = pnand %p466_p9, %p463_p8 }
  0x1a   :  { %471 = shalt.err (!%p468_p10)
}
  0x1b   :  { %s472_s7 = scalar_lea.vmem %s40_s27, 256  ;;  %p477_p12 = scmp.lt.s32.totalorder %s40_s27, %s40_s27 }
  0x1c   :  { %p473_p11 = scmp.ne.s32.totalorder %s40_s27, %s472_s7  ;;  %p478_p13 = scmp.lt.s32.totalorder %s472_s7, %s472_s7 }
  0x1e   :  { %p479_p0 = por %p478_p13, %p477_p12 }
  0x20   :  { %p480_p1 = pnand %p479_p0, %p473_p11 }
  0x22   :  { %483 = shalt.err (!%p480_p1)
}
  0x23   :  { %s605_s8 = smov 128   ;;  %s606_s9 = smov 8  }
  0x24   :  { %45 = dma.hbm_to_vmem [thread:$0]  %s837_s2, 256, %s40_s27, [#allocation3], %s605_s8, %s605_s8, %s606_s9  }
  0x25   :  { %550 = dma.done.wait [#allocation5], 16  }
  0x26   :  { %551 = vsyncadd [#allocation5], 4294967280 }
  0x27   :  { %552 = dma.done.wait [#allocation6], 16  }
  0x28   :  { %553 = vsyncadd [#allocation6], 4294967280 }
  0x29   :  { %554 = dma.done.wait [#allocation3], 256  }
  0x2a   :  { %555 = vsyncadd [#allocation3], 4294967040 }
  0x2b   :  { %55 = sfence }
  0x2c   :  { %s659_s12 = sld [smem:[#allocation2]]  ;;  %s661_s13 = sld [smem:[#allocation2 + $0x1]]  ;;  %v607_v0 = vmov 0.0   ;;  %v699_v1 = vmov 0.0   ;;  %v701_v2 = vmov 0.0   ;;  %v703_v3 = vmov 0.0  }
  0x2d   :  { %62 = vst [vmem:[#allocation9] sm:$0xff] %v607_v0  ;;  %63 = vst [vmem:[#allocation9 + $0x8] sm:$0xff] %v607_v0  ;;  %s663_s2 = sld [smem:[#allocation2 + $0x2]]  ;;  %s665_s14 = sld [smem:[#allocation2 + $0x3]]  ;;  %v705_v4 = vmov 0.0   ;;  %v707_v5 = vmov 0.0  }
  0x2e   :  { %64 = vst [vmem:[#allocation9 + $0x10] sm:$0xff] %v607_v0  ;;  %65 = vst [vmem:[#allocation9 + $0x18] sm:$0xff] %v607_v0  ;;  %s667_s15 = sld [smem:[#allocation2 + $0x4]]  ;;  %s669_s16 = sld [smem:[#allocation2 + $0x5]]  ;;  %v709_v6 = vmov 0.0   ;;  %v711_v7 = vmov 0.0  }
  0x2f   :  { %66 = vst [vmem:[#allocation9 + $0x20] sm:$0xff] %v607_v0  ;;  %67 = vst [vmem:[#allocation9 + $0x28] sm:$0xff] %v607_v0  ;;  %s671_s17 = sld [smem:[#allocation2 + $0x6]]  ;;  %s673_s18 = sld [smem:[#allocation2 + $0x7]]  ;;  %v713_v8 = vmov 0.0   ;;  %v715_v9 = vmov 0.0  }
  0x30   :  { %68 = vst [vmem:[#allocation9 + $0x30] sm:$0xff] %v607_v0  ;;  %69 = vst [vmem:[#allocation9 + $0x38] sm:$0xff] %v607_v0  ;;  %s675_s19 = sld [smem:[#allocation2 + $0x8]]  ;;  %s677_s20 = sld [smem:[#allocation2 + $0x9]]  ;;  %v717_v10 = vmov 0.0  }
  0x31   :  { %70 = vst [vmem:[#allocation9 + $0x40] sm:$0xff] %v607_v0  ;;  %71 = vst [vmem:[#allocation9 + $0x48] sm:$0xff] %v607_v0  ;;  %s679_s21 = sld [smem:[#allocation7]]  ;;  %s681_s22 = sld [smem:[#allocation7 + $0x1]] }
  0x32   :  { %s683_s23 = sld [smem:[#allocation7 + $0x2]]  ;;  %s685_s24 = sld [smem:[#allocation7 + $0x3]] }
  0x33   :  { %s687_s1 = sld [smem:[#allocation7 + $0x4]]  ;;  %s689_s25 = sld [smem:[#allocation7 + $0x5]] }
  0x34   :  { %s691_s26 = sld [smem:[#allocation7 + $0x6]]  ;;  %s693_s27 = sld [smem:[#allocation7 + $0x7]] }
  0x35   :  { %s695_s28 = sld [smem:[#allocation7 + $0x8]]  ;;  %s697_s29 = sld [smem:[#allocation7 + $0x9]] }
  0x36   :  { %s719_s30 = smov 0  }
  0x37 LB: > { %s334_s4 = sshll.u32 %s600_s30, 3  ;;  %v111_v12 = vstv %s659_s12  ;;  %v114_v13 = vstv %s679_s21  ;;  %v122_v14 = vstv %s661_s13  ;;  %v125_v15 = vstv %s681_s22  ;;  %s97_s30 = sadd.s32 1, %s600_s30   ;;  %s600_s30 = sphi %s719_s30, %s97_s30   ;;  %v596_v10 = vphi %v717_v10, %v848_v10   ;;  %v592_v9 = vphi %v715_v9, %v847_v9   ;;  %v588_v8 = vphi %v713_v8, %v846_v8   ;;  %v584_v7 = vphi %v711_v7, %v845_v7   ;;  %v580_v6 = vphi %v709_v6, %v844_v6   ;;  %v576_v5 = vphi %v707_v5, %v843_v5   ;;  %v572_v4 = vphi %v705_v4, %v842_v4   ;;  %v568_v3 = vphi %v703_v3, %v841_v3   ;;  %v564_v2 = vphi %v701_v2, %v840_v2   ;;  %v560_v1 = vphi %v699_v1, %v839_v1  }
  0x38   : > { %s109_s5 = scalar_lea.vmem [#allocation8], %s334_s4  ;;  %v133_v18 = vstv %s663_s2  ;;  %v136_v19 = vstv %s683_s23  ;;  %v144_v21 = vstv %s665_s14  ;;  %v147_v22 = vstv %s685_s24  ;;  %p94_p2 = scmp.ge.s32.totalorder %s97_s30, 2  }
  0x39   : > { %v755_v11 = vld [vmem:[%s109_s5] sm:$0xff]  ;;  %v155_v23 = vstv %s667_s15  ;;  %v158_v29 = vstv %s687_s1  ;;  %v166_v30 = vstv %s669_s16  ;;  %s608_s0 = smov (%p94_p2), [#allocation9]  }
  0x3a   : > { %v112_v16 = vmul.f32 %v111_v12, %v755_v11  ;;  %v123_v17 = vmul.f32 %v122_v14, %v755_v11  ;;  %v134_v20 = vmul.f32 %v133_v18, %v755_v11  ;;  %v145_v26 = vmul.f32 %v144_v21, %v755_v11  ;;  %s265_s6 = sshll.u32 (%p94_p2), %s608_s0, 4  ;;  %s266_s6 = int_to_ptr.vmem [resolvable:$true] %s265_s6 }
  0x3b   : > { %v156_v27 = vmul.f32 %v155_v23, %v755_v11  ;;  %v169_v31 = vstv %s689_s25  ;;  %v167_v37 = vmul.f32 %v166_v30, %v755_v11  ;;  %v177_v38 = vstv %s671_s17  ;;  %s484_s7 = scalar_lea.vmem (%p94_p2), %s266_s6, 1280  ;;  %p489_p4 = scmp.lt.s32.totalorder (%p94_p2), %s266_s6, %s266_s6 }
  0x3c   : > { %v335_v24 = vround.rtne.f32 %v112_v16  ;;  %v336_v25 = vround.rtne.f32 %v123_v17  ;;  %v337_v28 = vround.rtne.f32 %v134_v20  ;;  %v338_v34 = vround.rtne.f32 %v145_v26  ;;  %p485_p3 = scmp.ne.s32.totalorder (%p94_p2), %s266_s6, %s484_s7  ;;  %p490_p5 = scmp.lt.s32.totalorder (%p94_p2), %s484_s7, %s484_s7 }
  0x3d   : > { %v339_v35 = vround.rtne.f32 %v156_v27  ;;  %v180_v39 = vstv %s691_s26  ;;  %v340_v45 = vround.rtne.f32 %v167_v37  ;;  %v178_v46 = vmul.f32 %v177_v38, %v755_v11 }
  0x3e   : > { %v115_v32 = vadd.f32 %v335_v24, %v114_v13  ;;  %v126_v33 = vadd.f32 %v336_v25, %v125_v15  ;;  %v137_v36 = vadd.f32 %v337_v28, %v136_v19  ;;  %v148_v42 = vadd.f32 %v338_v34, %v147_v22  ;;  %p491_p6 = por (%p94_p2), %p490_p5, %p489_p4 }
  0x3f   : > { %v159_v43 = vadd.f32 %v339_v35, %v158_v29  ;;  %v188_v47 = vstv %s673_s18  ;;  %v170_v53 = vadd.f32 %v340_v45, %v169_v31  ;;  %v341_v54 = vround.rtne.f32 %v178_v46 }
  0x40   : > { %v116_v40 = vmax.f32 %v115_v32, 0.0  ;;  %v127_v41 = vmax.f32 %v126_v33, 0.0  ;;  %v138_v44 = vmax.f32 %v137_v36, 0.0  ;;  %v149_v50 = vmax.f32 %v148_v42, 0.0  ;;  %p492_p7 = pnand (%p94_p2), %p491_p6, %p485_p3 }
  0x41   : > { %v160_v51 = vmax.f32 %v159_v43, 0.0  ;;  %v189_v55 = vmul.f32 %v188_v47, %v755_v11  ;;  %v171_v61 = vmax.f32 %v170_v53, 0.0  ;;  %v181_v62 = vadd.f32 %v341_v54, %v180_v39 }
  0x42   : > { %v117_v48 = vmin.f32 %v116_v40, 255.0  ;;  %v128_v49 = vmin.f32 %v127_v41, 255.0  ;;  %v139_v52 = vmin.f32 %v138_v44, 255.0  ;;  %v150_v58 = vmin.f32 %v149_v50, 255.0 }
  0x43   : > { %v161_v59 = vmin.f32 %v160_v51, 255.0  ;;  %v342_v63 = vround.rtne.f32 %v189_v55  ;;  %v172_v23 = vmin.f32 %v171_v61, 255.0  ;;  %v182_v24 = vmax.f32 %v181_v62, 0.0  ;;  %v221_v61 = vld [vmem:[#allocation9] sm:$0xff] (%p94_p2)  ;;  %v225_v62 = vld [vmem:[#allocation9 + $0x8] sm:$0xff] (%p94_p2) }
  0x44   : > { %v118_v56 = vsub.f32 %v117_v48, %v114_v13  ;;  %v129_v57 = vsub.f32 %v128_v49, %v125_v15  ;;  %v140_v60 = vsub.f32 %v139_v52, %v136_v19  ;;  %v151_v14 = vsub.f32 %v150_v58, %v147_v22 }
  0x45   : > { %v162_v18 = vsub.f32 %v161_v59, %v158_v29  ;;  %v191_v25 = vstv %s693_s27  ;;  %v173_v33 = vsub.f32 %v172_v23, %v169_v31  ;;  %v183_v34 = vmin.f32 %v182_v24, 255.0  ;;  %v241_v23 = vld [vmem:[#allocation9 + $0x28] sm:$0xff] (%p94_p2) }
  0x46   : > { %v119_v0 = vsub.f32 %v118_v56, %v112_v16  ;;  %v130_v12 = vsub.f32 %v129_v57, %v123_v17  ;;  %v141_v21 = vsub.f32 %v140_v60, %v134_v20  ;;  %v152_v32 = vsub.f32 %v151_v14, %v145_v26 }
  0x47   : > { %v163_v13 = vsub.f32 %v162_v18, %v156_v27  ;;  %v192_v19 = vadd.f32 %v342_v63, %v191_v25  ;;  %v174_v29 = vsub.f32 %v173_v33, %v167_v37  ;;  %v184_v36 = vsub.f32 %v183_v34, %v180_v39  ;;  %v229_v63 = vld [vmem:[#allocation9 + $0x10] sm:$0xff] (%p94_p2)  ;;  %v233_v18 = vld [vmem:[#allocation9 + $0x18] sm:$0xff] (%p94_p2) }
  0x48   : > { %v120_v28 = vmul.f32 %v119_v0, %v119_v0  ;;  %v131_v30 = vmul.f32 %v130_v12, %v130_v12  ;;  %v142_v15 = vmul.f32 %v141_v21, %v141_v21  ;;  %v153_v17 = vmul.f32 %v152_v32, %v152_v32  ;;  %v237_v21 = vld [vmem:[#allocation9 + $0x20] sm:$0xff] (%p94_p2)  ;;  %v249_v32 = vld [vmem:[#allocation9 + $0x38] sm:$0xff] (%p94_p2) }
  0x49   : > { %v164_v20 = vmul.f32 %v163_v13, %v163_v13  ;;  %v193_v38 = vmax.f32 %v192_v19, 0.0  ;;  %v199_v31 = vstv %s675_s19  ;;  %v175_v40 = vmul.f32 %v174_v29, %v174_v29  ;;  %v253_v13 = vld [vmem:[#allocation9 + $0x40] sm:$0xff] (%p94_p2) }
  0x4a   : > { %v121_v35 = vadd.f32 %v596_v10, %v120_v28   ;;  %v132_v16 = vadd.f32 %v592_v9, %v131_v30   ;;  %v143_v22 = vadd.f32 %v588_v8, %v142_v15   ;;  %v154_v26 = vadd.f32 %v584_v7, %v153_v17   ;;  %v245_v30 = vld [vmem:[#allocation9 + $0x30] sm:$0xff] (%p94_p2)  ;;  %v257_v15 = vld [vmem:[#allocation9 + $0x48] sm:$0xff] (%p94_p2) }
  0x4b   : > { %v165_v27 = vadd.f32 %v580_v6, %v164_v20   ;;  %v185_v41 = vsub.f32 %v184_v36, %v178_v46  ;;  %v194_v42 = vmin.f32 %v193_v38, 255.0  ;;  %v200_v10 = vmul.f32 %v199_v31, %v755_v11 }
  0x4c   : > { %v202_v43 = vstv %s695_s28  ;;  %v210_v9 = vstv %s677_s20  ;;  %v176_v44 = vadd.f32 %v576_v5, %v175_v40   ;;  %v213_v48 = vstv %s697_s29 }
  0x4d   : > { %v186_v45 = vmul.f32 %v185_v41, %v185_v41  ;;  %v195_v8 = vsub.f32 %v194_v42, %v191_v25  ;;  %v343_v37 = vround.rtne.f32 %v200_v10  ;;  %v211_v39 = vmul.f32 %v210_v9, %v755_v11 }
  0x4e   : > { %v847_v9 = vmov %v132_v16  ;;  %v222_v0 = vadd.f32 (%p94_p2), %v221_v61, %v121_v35  ;;  %v226_v12 = vadd.f32 (%p94_p2), %v225_v62, %v132_v16  ;;  %v230_v14 = vadd.f32 (%p94_p2), %v229_v63, %v143_v22 }
  0x4f   : > { %v187_v47 = vadd.f32 %v572_v4, %v186_v45   ;;  %v196_v7 = vsub.f32 %v195_v8, %v189_v55  ;;  %v203_v6 = vadd.f32 %v343_v37, %v202_v43  ;;  %v344_v49 = vround.rtne.f32 %v211_v39 }
  0x50   : > { %v846_v8 = vmov %v143_v22  ;;  %v234_v24 = vadd.f32 (%p94_p2), %v233_v18, %v154_v26  ;;  %v238_v25 = vadd.f32 (%p94_p2), %v237_v21, %v165_v27  ;;  %v242_v28 = vadd.f32 (%p94_p2), %v241_v23, %v176_v44  ;;  %223 = vst [vmem:[#allocation9] sm:$0xff] (%p94_p2), %v222_v0  ;;  %227 = vst [vmem:[#allocation9 + $0x8] sm:$0xff] (%p94_p2), %v226_v12 }
  0x51   : > { %v197_v50 = vmul.f32 %v196_v7, %v196_v7  ;;  %v204_v46 = vmax.f32 %v203_v6, 0.0  ;;  %v214_v51 = vadd.f32 %v344_v49, %v213_v48  ;;  %v844_v6 = vmov %v165_v27  ;;  %231 = vst [vmem:[#allocation9 + $0x10] sm:$0xff] (%p94_p2), %v230_v14 }
  0x52   : > { %v845_v7 = vmov %v154_v26  ;;  %235 = vst [vmem:[#allocation9 + $0x18] sm:$0xff] (%p94_p2), %v234_v24  ;;  %239 = vst [vmem:[#allocation9 + $0x20] sm:$0xff] (%p94_p2), %v238_v25 }
  0x53   : > { %v198_v52 = vadd.f32 %v568_v3, %v197_v50   ;;  %v205_v53 = vmin.f32 %v204_v46, 255.0  ;;  %v215_v54 = vmax.f32 %v214_v51, 0.0  ;;  %243 = vst [vmem:[#allocation9 + $0x28] sm:$0xff] (%p94_p2), %v242_v28 }
  0x55   : > { %v206_v56 = vsub.f32 %v205_v53, %v202_v43  ;;  %v216_v5 = vmin.f32 %v215_v54, 255.0  ;;  %v841_v3 = vmov %v198_v52 }
  0x57   : > { %v207_v57 = vsub.f32 %v206_v56, %v200_v10  ;;  %v217_v58 = vsub.f32 %v216_v5, %v213_v48  ;;  %v843_v5 = vmov %v176_v44  ;;  %v848_v10 = vmov %v121_v35 }
  0x59   : > { %v208_v59 = vmul.f32 %v207_v57, %v207_v57  ;;  %v218_v60 = vsub.f32 %v217_v58, %v211_v39  ;;  %96 = sbr.rel (!%p94_p2) target bundleno = 55 (0x37), region = 66 }
  0x5b   : > { %v209_v11 = vadd.f32 %v564_v2, %v208_v59   ;;  %v219_v4 = vmul.f32 %v218_v60, %v218_v60 }
  0x5d   : > { %v220_v55 = vadd.f32 %v560_v1, %v219_v4   ;;  %v840_v2 = vmov %v209_v11  ;;  %v842_v4 = vmov %v187_v47  ;;  %v254_v3 = vadd.f32 (%p94_p2), %v253_v13, %v209_v11 }
  0x5e   :  { %v250_v2 = vadd.f32 (%p94_p2), %v249_v32, %v198_v52 }
  0x5f   : > { %v839_v1 = vmov %v220_v55  ;;  %v258_v33 = vadd.f32 (%p94_p2), %v257_v15, %v220_v55  ;;  %255 = vst [vmem:[#allocation9 + $0x40] sm:$0xff] (%p94_p2), %v254_v3 }
  0x60   :  { %v246_v1 = vadd.f32 %v245_v30, %v187_v47  ;;  %251 = vst [vmem:[#allocation9 + $0x38] sm:$0xff] %v250_v2 }
  0x61   :  { %259 = vst [vmem:[#allocation9 + $0x48] sm:$0xff] %v258_v33 }
  0x62   :  { %247 = vst [vmem:[#allocation9 + $0x30] sm:$0xff] %v246_v1 }
  0x63   :  { %495 = shalt.err (!%p492_p7)
}
  0x64   :  { %s496_s12 = scalar_lea.hbm %s838_s3, 1280 }
  0x65   :  { %p497_p8 = scmp.ne.s32.totalorder %s838_s3, %s496_s12  ;;  %p500_p9 = scmp.lt.u32.totalorder %s496_s12, %s838_s3 }
  0x67   :  { %p502_p10 = pnand %p500_p9, %p497_p8 }
  0x69   :  { %505 = shalt.err (!%p502_p10)
}
  0x6a   :  { %271 = dma.vmem_to_hbm [thread:$0]  %s266_s6, 1280, %s838_s3, [#allocation4], %s605_s8, %s605_s8, %s606_s9  }
  0x6b   :  { %556 = dma.done.wait [#allocation4], 1280  }
  0x6c   :  { %557 = vsyncadd [#allocation4], 4294966016 }
  0x6d   :  { %275 = vsyncpa [#allocation3], 1 }
  0x6e   :  { %276 = vsyncpa [#allocation4], 1 }
  0x6f   :  { %277 = vsyncpa [#allocation5], 1 }
  0x70   :  { %278 = vsyncpa [#allocation6], 1 }

</bundles_post_ra>
